<compile_context>
chip_gen: v7x
topology: tpu7x:2x2x1
jax: 0.10.0
libtpu: 0.0.40
codegen_flags: <defaults>
</compile_context>

<pallas_src>
import jax
import jax.numpy as jnp
from jax.experimental import pallas as pl
from jax.experimental.pallas import tpu as pltpu

_LANES = 128          # lane (fast) dimension: 128 rotations per sublane row
_SUBLANES = 8         # sublane alignment for f32 vreg tiles
_ROW_TILE = 512       # sublane rows per grid step (multiple of 8)
_EPS = 1e-12          # matches torch.nn.functional.normalize default eps


def _rot6d_kernel(x_ref, o_ref):
    # x_ref: (6, TR, 128) f32, o_ref: (9, TR, 128) f32
    a1x, a1y, a1z = x_ref[0], x_ref[1], x_ref[2]
    a2x, a2y, a2z = x_ref[3], x_ref[4], x_ref[5]

    eps_sq = jnp.float32(_EPS * _EPS)

    # b1 = a1 / max(|a1|, eps)  -- rsqrt on the clamped squared norm (EUP slot)
    inv1 = jax.lax.rsqrt(jnp.maximum(a1x * a1x + a1y * a1y + a1z * a1z, eps_sq))
    b1x, b1y, b1z = a1x * inv1, a1y * inv1, a1z * inv1

    # dot = <b1, a2>
    dot = b1x * a2x + b1y * a2y + b1z * a2z

    # b2 = normalize(a2 - dot * b1)
    u2x, u2y, u2z = a2x - dot * b1x, a2y - dot * b1y, a2z - dot * b1z
    inv2 = jax.lax.rsqrt(jnp.maximum(u2x * u2x + u2y * u2y + u2z * u2z, eps_sq))
    b2x, b2y, b2z = u2x * inv2, u2y * inv2, u2z * inv2

    # b3 = b1 x b2
    b3x = b1y * b2z - b1z * b2y
    b3y = b1z * b2x - b1x * b2z
    b3z = b1x * b2y - b1y * b2x

    # Direct dense (TR, 128) stores; row r = i*3 + j  <=>  out[n, i, j] = b_{j+1}[i]
    o_ref[0] = b1x
    o_ref[1] = b2x
    o_ref[2] = b3x
    o_ref[3] = b1y
    o_ref[4] = b2y
    o_ref[5] = b3y
    o_ref[6] = b1z
    o_ref[7] = b2z
    o_ref[8] = b3z


@jax.jit
def continous_rot_repr_decode(module_input):
    """Equivalent of ContinousRotReprDecoder.forward.

    module_input: any float array whose total size is divisible by 6.
    returns: (N, 3, 3) rotation matrices, N = module_input.size // 6.
    """
    x = jnp.asarray(module_input, dtype=jnp.float32)
    flat = x.reshape(-1, 3, 2)                     # (N, 3, 2): [:, i, k] = col-k comp-i
    n = flat.shape[0]

    # Pad N to a multiple of 8*128 -> sublane rows r are a multiple of 8, so every
    # block (including the grid tail) is sublane-aligned and stores are unmasked.
    chunk = _SUBLANES * _LANES
    n_pad = pl.cdiv(n, chunk) * chunk
    r = n_pad // _LANES

    # component-major slab (6, r, 128): rows 0..2 = a1 xyz, rows 3..5 = a2 xyz
    comp = jnp.transpose(flat, (2, 1, 0)).reshape(6, n)
    comp = jnp.pad(comp, ((0, 0), (0, n_pad - n))).reshape(6, r, _LANES)

    tr = min(_ROW_TILE, r)                         # block rows (full dim if r small)
    grid = (pl.cdiv(r, tr),)                       # ragged last block stays 8-aligned

    cost = pl.CostEstimate(
        flops=30 * n_pad,
        transcendentals=2 * n_pad,
        bytes_accessed=(6 + 9) * 4 * n_pad,
    )

    out = pl.pallas_call(
        _rot6d_kernel,
        out_shape=jax.ShapeDtypeStruct((9, r, _LANES), jnp.float32),
        grid_spec=pl.GridSpec(
            grid=grid,
            in_specs=[pl.BlockSpec((6, tr, _LANES), lambda i: (0, i, 0))],
            out_specs=pl.BlockSpec((9, tr, _LANES), lambda i: (0, i, 0)),
        ),
        compiler_params=pltpu.CompilerParams(
            dimension_semantics=("parallel",),
        ),
        cost_estimate=cost,
    )(comp)

    # (9, r, 128) -> (9, N) -> (N, 3, 3) with out[n, i, j] = b_{j+1}[i]
    out = out.reshape(9, n_pad)[:, :n]
    return jnp.transpose(out.reshape(3, 3, n), (2, 0, 1))


def _reference_decode(module_input):
    """Pure-JAX reference mirroring the PyTorch forward (exact divides)."""
    x = jnp.asarray(module_input, dtype=jnp.float32).reshape(-1, 3, 2)
    a1, a2 = x[:, :, 0], x[:, :, 1]
    n1 = jnp.maximum(jnp.linalg.norm(a1, axis=1, keepdims=True), _EPS)
    b1 = a1 / n1
    dot = jnp.sum(b1 * a2, axis=1, keepdims=True)
    u2 = a2 - dot * b1
    n2 = jnp.maximum(jnp.linalg.norm(u2, axis=1, keepdims=True), _EPS)
    b2 = u2 / n2
    b3 = jnp.cross(b1, b2, axis=1)
    return jnp.stack([b1, b2, b3], axis=-1)


if __name__ == "__main__":
    key = jax.random.PRNGKey(0)
    k1, k2 = jax.random.split(key)

    # small case: batch=2, num_joints=8, 6D repr per joint -> N = 16 rotations
    x_small = jax.random.normal(k1, (2, 8, 6), dtype=jnp.float32)
    out_small = jax.block_until_ready(continous_rot_repr_decode(x_small))
    ref_small = _reference_decode(x_small)
    assert out_small.shape == (16, 3, 3), out_small.shape
    assert jnp.allclose(out_small, ref_small, atol=2e-5, rtol=2e-5), (
        float(jnp.max(jnp.abs(out_small - ref_small)))
    )

    # slightly larger case exercising multiple sublane rows (N = 2100 -> r = 24)
    x_big = jax.random.normal(k2, (3, 700, 6), dtype=jnp.float32)
    out_big = jax.block_until_ready(continous_rot_repr_decode(x_big))
    ref_big = _reference_decode(x_big)
    assert out_big.shape == (2100, 3, 3), out_big.shape
    assert jnp.allclose(out_big, ref_big, atol=2e-5, rtol=2e-5), (
        float(jnp.max(jnp.abs(out_big - ref_big)))
    )

    print("KERNEL_OK")
</pallas_src>

<mosaic_0001>
module attributes {stable_mosaic.version = 11 : i64} {
  func.func @_rot6d_kernel(%arg0: i32, %arg1: memref<6x8x128xf32, #tpu.memory_space<vmem>>, %arg2: memref<9x8x128xf32, #tpu.memory_space<vmem>>) attributes {dimension_semantics = [#tpu.dimension_semantics<parallel>], iteration_bounds = array<i64: 1>, scalar_prefetch = 0 : i64, scratch_operands = 0 : i64, tpu.core_type = #tpu.core_type<tc>, window_params = [{transform_indices = @transform_0, window_bounds = array<i64: 6, 8, 128>}, {transform_indices = @transform_1, window_bounds = array<i64: 9, 8, 128>}]} {
    %c0 = arith.constant 0 : index
    %c0_0 = arith.constant 0 : index
    %c0_1 = arith.constant 0 : index
    %0 = vector.load %arg1[%c0, %c0_0, %c0_1] : memref<6x8x128xf32, #tpu.memory_space<vmem>>, vector<1x8x128xf32>
    %1 = vector.shape_cast %0 : vector<1x8x128xf32> to vector<8x128xf32>
    %c1 = arith.constant 1 : index
    %c0_2 = arith.constant 0 : index
    %c0_3 = arith.constant 0 : index
    %2 = vector.load %arg1[%c1, %c0_2, %c0_3] : memref<6x8x128xf32, #tpu.memory_space<vmem>>, vector<1x8x128xf32>
    %3 = vector.shape_cast %2 : vector<1x8x128xf32> to vector<8x128xf32>
    %c2 = arith.constant 2 : index
    %c0_4 = arith.constant 0 : index
    %c0_5 = arith.constant 0 : index
    %4 = vector.load %arg1[%c2, %c0_4, %c0_5] : memref<6x8x128xf32, #tpu.memory_space<vmem>>, vector<1x8x128xf32>
    %5 = vector.shape_cast %4 : vector<1x8x128xf32> to vector<8x128xf32>
    %c3 = arith.constant 3 : index
    %c0_6 = arith.constant 0 : index
    %c0_7 = arith.constant 0 : index
    %6 = vector.load %arg1[%c3, %c0_6, %c0_7] : memref<6x8x128xf32, #tpu.memory_space<vmem>>, vector<1x8x128xf32>
    %7 = vector.shape_cast %6 : vector<1x8x128xf32> to vector<8x128xf32>
    %c4 = arith.constant 4 : index
    %c0_8 = arith.constant 0 : index
    %c0_9 = arith.constant 0 : index
    %8 = vector.load %arg1[%c4, %c0_8, %c0_9] : memref<6x8x128xf32, #tpu.memory_space<vmem>>, vector<1x8x128xf32>
    %9 = vector.shape_cast %8 : vector<1x8x128xf32> to vector<8x128xf32>
    %c5 = arith.constant 5 : index
    %c0_10 = arith.constant 0 : index
    %c0_11 = arith.constant 0 : index
    %10 = vector.load %arg1[%c5, %c0_10, %c0_11] : memref<6x8x128xf32, #tpu.memory_space<vmem>>, vector<1x8x128xf32>
    %11 = vector.shape_cast %10 : vector<1x8x128xf32> to vector<8x128xf32>
    %12 = arith.mulf %1, %1 : vector<8x128xf32>
    %13 = arith.mulf %3, %3 : vector<8x128xf32>
    %14 = arith.addf %12, %13 : vector<8x128xf32>
    %15 = arith.mulf %5, %5 : vector<8x128xf32>
    %16 = arith.addf %14, %15 : vector<8x128xf32>
    %cst = arith.constant 1.000000e-24 : f32
    %17 = vector.broadcast %cst : f32 to vector<8x128xf32>
    %18 = arith.maximumf %16, %17 : vector<8x128xf32>
    %19 = math.rsqrt %18 : vector<8x128xf32>
    %20 = arith.mulf %1, %19 : vector<8x128xf32>
    %21 = arith.mulf %3, %19 : vector<8x128xf32>
    %22 = arith.mulf %5, %19 : vector<8x128xf32>
    %23 = arith.mulf %20, %7 : vector<8x128xf32>
    %24 = arith.mulf %21, %9 : vector<8x128xf32>
    %25 = arith.addf %23, %24 : vector<8x128xf32>
    %26 = arith.mulf %22, %11 : vector<8x128xf32>
    %27 = arith.addf %25, %26 : vector<8x128xf32>
    %28 = arith.mulf %27, %20 : vector<8x128xf32>
    %29 = arith.subf %7, %28 : vector<8x128xf32>
    %30 = arith.mulf %27, %21 : vector<8x128xf32>
    %31 = arith.subf %9, %30 : vector<8x128xf32>
    %32 = arith.mulf %27, %22 : vector<8x128xf32>
    %33 = arith.subf %11, %32 : vector<8x128xf32>
    %34 = arith.mulf %29, %29 : vector<8x128xf32>
    %35 = arith.mulf %31, %31 : vector<8x128xf32>
    %36 = arith.addf %34, %35 : vector<8x128xf32>
    %37 = arith.mulf %33, %33 : vector<8x128xf32>
    %38 = arith.addf %36, %37 : vector<8x128xf32>
    %cst_12 = arith.constant 1.000000e-24 : f32
    %39 = vector.broadcast %cst_12 : f32 to vector<8x128xf32>
    %40 = arith.maximumf %38, %39 : vector<8x128xf32>
    %41 = math.rsqrt %40 : vector<8x128xf32>
    %42 = arith.mulf %29, %41 : vector<8x128xf32>
    %43 = arith.mulf %31, %41 : vector<8x128xf32>
    %44 = arith.mulf %33, %41 : vector<8x128xf32>
    %45 = arith.mulf %21, %44 : vector<8x128xf32>
    %46 = arith.mulf %22, %43 : vector<8x128xf32>
    %47 = arith.subf %45, %46 : vector<8x128xf32>
    %48 = arith.mulf %22, %42 : vector<8x128xf32>
    %49 = arith.mulf %20, %44 : vector<8x128xf32>
    %50 = arith.subf %48, %49 : vector<8x128xf32>
    %51 = arith.mulf %20, %43 : vector<8x128xf32>
    %52 = arith.mulf %21, %42 : vector<8x128xf32>
    %53 = arith.subf %51, %52 : vector<8x128xf32>
    %c0_13 = arith.constant 0 : index
    %c0_14 = arith.constant 0 : index
    %c0_15 = arith.constant 0 : index
    %54 = vector.load %arg2[%c0_13, %c0_14, %c0_15] : memref<9x8x128xf32, #tpu.memory_space<vmem>>, vector<1x8x128xf32>
    %55 = vector.shape_cast %54 : vector<1x8x128xf32> to vector<8x128xf32>
    %56 = vector.shape_cast %20 : vector<8x128xf32> to vector<1x8x128xf32>
    tpu.vector_store %arg2[%c0_13, %c0_14, %c0_15], %56 {strides = array<i32>} : memref<9x8x128xf32, #tpu.memory_space<vmem>>, vector<1x8x128xf32>,
    %c1_16 = arith.constant 1 : index
    %c0_17 = arith.constant 0 : index
    %c0_18 = arith.constant 0 : index
    %57 = vector.load %arg2[%c1_16, %c0_17, %c0_18] : memref<9x8x128xf32, #tpu.memory_space<vmem>>, vector<1x8x128xf32>
    %58 = vector.shape_cast %57 : vector<1x8x128xf32> to vector<8x128xf32>
    %59 = vector.shape_cast %42 : vector<8x128xf32> to vector<1x8x128xf32>
    tpu.vector_store %arg2[%c1_16, %c0_17, %c0_18], %59 {strides = array<i32>} : memref<9x8x128xf32, #tpu.memory_space<vmem>>, vector<1x8x128xf32>,
    %c2_19 = arith.constant 2 : index
    %c0_20 = arith.constant 0 : index
    %c0_21 = arith.constant 0 : index
    %60 = vector.load %arg2[%c2_19, %c0_20, %c0_21] : memref<9x8x128xf32, #tpu.memory_space<vmem>>, vector<1x8x128xf32>
    %61 = vector.shape_cast %60 : vector<1x8x128xf32> to vector<8x128xf32>
    %62 = vector.shape_cast %47 : vector<8x128xf32> to vector<1x8x128xf32>
    tpu.vector_store %arg2[%c2_19, %c0_20, %c0_21], %62 {strides = array<i32>} : memref<9x8x128xf32, #tpu.memory_space<vmem>>, vector<1x8x128xf32>,
    %c3_22 = arith.constant 3 : index
    %c0_23 = arith.constant 0 : index
    %c0_24 = arith.constant 0 : index
    %63 = vector.load %arg2[%c3_22, %c0_23, %c0_24] : memref<9x8x128xf32, #tpu.memory_space<vmem>>, vector<1x8x128xf32>
    %64 = vector.shape_cast %63 : vector<1x8x128xf32> to vector<8x128xf32>
    %65 = vector.shape_cast %21 : vector<8x128xf32> to vector<1x8x128xf32>
    tpu.vector_store %arg2[%c3_22, %c0_23, %c0_24], %65 {strides = array<i32>} : memref<9x8x128xf32, #tpu.memory_space<vmem>>, vector<1x8x128xf32>,
    %c4_25 = arith.constant 4 : index
    %c0_26 = arith.constant 0 : index
    %c0_27 = arith.constant 0 : index
    %66 = vector.load %arg2[%c4_25, %c0_26, %c0_27] : memref<9x8x128xf32, #tpu.memory_space<vmem>>, vector<1x8x128xf32>
    %67 = vector.shape_cast %66 : vector<1x8x128xf32> to vector<8x128xf32>
    %68 = vector.shape_cast %43 : vector<8x128xf32> to vector<1x8x128xf32>
    tpu.vector_store %arg2[%c4_25, %c0_26, %c0_27], %68 {strides = array<i32>} : memref<9x8x128xf32, #tpu.memory_space<vmem>>, vector<1x8x128xf32>,
    %c5_28 = arith.constant 5 : index
    %c0_29 = arith.constant 0 : index
    %c0_30 = arith.constant 0 : index
    %69 = vector.load %arg2[%c5_28, %c0_29, %c0_30] : memref<9x8x128xf32, #tpu.memory_space<vmem>>, vector<1x8x128xf32>
    %70 = vector.shape_cast %69 : vector<1x8x128xf32> to vector<8x128xf32>
    %71 = vector.shape_cast %50 : vector<8x128xf32> to vector<1x8x128xf32>
    tpu.vector_store %arg2[%c5_28, %c0_29, %c0_30], %71 {strides = array<i32>} : memref<9x8x128xf32, #tpu.memory_space<vmem>>, vector<1x8x128xf32>,
    %c6 = arith.constant 6 : index
    %c0_31 = arith.constant 0 : index
    %c0_32 = arith.constant 0 : index
    %72 = vector.load %arg2[%c6, %c0_31, %c0_32] : memref<9x8x128xf32, #tpu.memory_space<vmem>>, vector<1x8x128xf32>
    %73 = vector.shape_cast %72 : vector<1x8x128xf32> to vector<8x128xf32>
    %74 = vector.shape_cast %22 : vector<8x128xf32> to vector<1x8x128xf32>
    tpu.vector_store %arg2[%c6, %c0_31, %c0_32], %74 {strides = array<i32>} : memref<9x8x128xf32, #tpu.memory_space<vmem>>, vector<1x8x128xf32>,
    %c7 = arith.constant 7 : index
    %c0_33 = arith.constant 0 : index
    %c0_34 = arith.constant 0 : index
    %75 = vector.load %arg2[%c7, %c0_33, %c0_34] : memref<9x8x128xf32, #tpu.memory_space<vmem>>, vector<1x8x128xf32>
    %76 = vector.shape_cast %75 : vector<1x8x128xf32> to vector<8x128xf32>
    %77 = vector.shape_cast %44 : vector<8x128xf32> to vector<1x8x128xf32>
    tpu.vector_store %arg2[%c7, %c0_33, %c0_34], %77 {strides = array<i32>} : memref<9x8x128xf32, #tpu.memory_space<vmem>>, vector<1x8x128xf32>,
    %c8 = arith.constant 8 : index
    %c0_35 = arith.constant 0 : index
    %c0_36 = arith.constant 0 : index
    %78 = vector.load %arg2[%c8, %c0_35, %c0_36] : memref<9x8x128xf32, #tpu.memory_space<vmem>>, vector<1x8x128xf32>
    %79 = vector.shape_cast %78 : vector<1x8x128xf32> to vector<8x128xf32>
    %80 = vector.shape_cast %53 : vector<8x128xf32> to vector<1x8x128xf32>
    tpu.vector_store %arg2[%c8, %c0_35, %c0_36], %80 {strides = array<i32>} : memref<9x8x128xf32, #tpu.memory_space<vmem>>, vector<1x8x128xf32>,
    return
  }
  func.func @transform_0(%arg0: i32) -> (i32, i32, i32) {
    %c0_i32 = arith.constant 0 : i32
    %c0_i32_0 = arith.constant 0 : i32
    %c0_i32_1 = arith.constant 0 : i32
    return %c0_i32, %arg0, %c0_i32_0 : i32, i32, i32
  }
  func.func @transform_1(%arg0: i32) -> (i32, i32, i32) {
    %c0_i32 = arith.constant 0 : i32
    %c0_i32_0 = arith.constant 0 : i32
    %c0_i32_1 = arith.constant 0 : i32
    return %c0_i32, %arg0, %c0_i32_0 : i32, i32, i32
  }
}

</mosaic_0001>

<bundles_post_ra>
// kernel: continous_rot_repr_decode.1
= control target key start
LH: loop header
LB: loop body
LE: loop exit
PB: predicated region body
PF: predicated region fallthrough
CT: control target
= control target key end

     0   :  { %s152_s0 = inlined_call_operand.vmem [shape: f32[6,8,128], index: 0, kind: input, shape index: {}]   ;;  %s153_s1 = inlined_call_operand.vmem [shape: f32[9,8,128], index: 1, kind: output, shape index: {}]  }
   0x1   :  { %v8_v0 = vld [vmem:[%s152_s0] sm:$0xff]  ;;  %v80_v1 = vld [vmem:[%s152_s0 + $0x8] sm:$0xff]  ;;  %v81_v2 = vld [vmem:[%s152_s0 + $0x10] sm:$0xff] }
   0x2   :  { %v19_v3 = vmul.f32 %v8_v0, %v8_v0  ;;  %v20_v4 = vmul.f32 %v80_v1, %v80_v1  ;;  %v22_v5 = vmul.f32 %v81_v2, %v81_v2  ;;  %v82_v10 = vld [vmem:[%s152_s0 + $0x18] sm:$0xff]  ;;  %v83_v11 = vld [vmem:[%s152_s0 + $0x20] sm:$0xff]  ;;  %v84_v12 = vld [vmem:[%s152_s0 + $0x28] sm:$0xff] }
   0x4   :  { %v21_v6 = vadd.f32 %v20_v4, %v19_v3 }
   0x6   :  { %v23_v7 = vadd.f32 %v22_v5, %v21_v6 }
   0x8   :  { %v24_v8 = vmax.f32 %v23_v7, 1e-24 }
   0xa   :  { %93 = vrsqrt.f32 %v24_v8 }
  0x14   :  { %v94_v9 = vpop.eup %93 }
  0x15   :  { %v26_v13 = vmul.f32 %v94_v9, %v8_v0  ;;  %v27_v14 = vmul.f32 %v94_v9, %v80_v1  ;;  %v28_v15 = vmul.f32 %v94_v9, %v81_v2 }
  0x17   :  { %59 = vst [vmem:[%s153_s1] sm:$0xff] %v26_v13  ;;  %87 = vst [vmem:[%s153_s1 + $0x18] sm:$0xff] %v27_v14  ;;  %v29_v16 = vmul.f32 %v82_v10, %v26_v13  ;;  %v30_v17 = vmul.f32 %v83_v11, %v27_v14  ;;  %v32_v18 = vmul.f32 %v84_v12, %v28_v15 }
  0x18   :  { %90 = vst [vmem:[%s153_s1 + $0x30] sm:$0xff] %v28_v15 }
  0x19   :  { %v31_v19 = vadd.f32 %v30_v17, %v29_v16 }
  0x1b   :  { %v33_v20 = vadd.f32 %v32_v18, %v31_v19 }
  0x1d   :  { %v34_v21 = vmul.f32 %v33_v20, %v26_v13  ;;  %v36_v22 = vmul.f32 %v33_v20, %v27_v14  ;;  %v38_v23 = vmul.f32 %v33_v20, %v28_v15 }
  0x1f   :  { %v35_v24 = vsub.f32 %v82_v10, %v34_v21  ;;  %v37_v25 = vsub.f32 %v83_v11, %v36_v22  ;;  %v39_v26 = vsub.f32 %v84_v12, %v38_v23 }
  0x21   :  { %v40_v27 = vmul.f32 %v35_v24, %v35_v24  ;;  %v41_v28 = vmul.f32 %v37_v25, %v37_v25  ;;  %v43_v29 = vmul.f32 %v39_v26, %v39_v26 }
  0x23   :  { %v42_v30 = vadd.f32 %v41_v28, %v40_v27 }
  0x25   :  { %v44_v31 = vadd.f32 %v43_v29, %v42_v30 }
  0x27   :  { %v45_v32 = vmax.f32 %v44_v31, 1e-24 }
  0x29   :  { %95 = vrsqrt.f32 %v45_v32 }
  0x33   :  { %v96_v33 = vpop.eup %95 }
  0x34   :  { %v47_v34 = vmul.f32 %v96_v33, %v35_v24  ;;  %v48_v35 = vmul.f32 %v96_v33, %v37_v25  ;;  %v49_v36 = vmul.f32 %v96_v33, %v39_v26 }
  0x36   :  { %85 = vst [vmem:[%s153_s1 + $0x8] sm:$0xff] %v47_v34  ;;  %v50_v37 = vmul.f32 %v49_v36, %v27_v14  ;;  %v51_v38 = vmul.f32 %v48_v35, %v28_v15  ;;  %88 = vst [vmem:[%s153_s1 + $0x20] sm:$0xff] %v48_v35  ;;  %v53_v39 = vmul.f32 %v47_v34, %v28_v15 }
  0x37   :  { %91 = vst [vmem:[%s153_s1 + $0x38] sm:$0xff] %v49_v36  ;;  %v54_v40 = vmul.f32 %v49_v36, %v26_v13  ;;  %v56_v41 = vmul.f32 %v48_v35, %v26_v13  ;;  %v57_v42 = vmul.f32 %v47_v34, %v27_v14 }
  0x38   :  { %v52_v43 = vsub.f32 %v50_v37, %v51_v38 }
  0x39   :  { %v55_v44 = vsub.f32 %v53_v39, %v54_v40  ;;  %v58_v45 = vsub.f32 %v56_v41, %v57_v42 }
  0x3a   :  { %86 = vst [vmem:[%s153_s1 + $0x10] sm:$0xff] %v52_v43 }
  0x3b   :  { %89 = vst [vmem:[%s153_s1 + $0x28] sm:$0xff] %v55_v44  ;;  %92 = vst [vmem:[%s153_s1 + $0x40] sm:$0xff] %v58_v45 }

</bundles_post_ra>
